<compile_context>
chip_gen: v7x
topology: tpu7x:2x2x1
jax: 0.10.0
libtpu: 0.0.40
codegen_flags: <defaults>
</compile_context>

<pallas_src>
import jax
import jax.numpy as jnp
from jax.experimental import pallas as pl
from jax.experimental.pallas import tpu as pltpu

# ---- module hyper-parameters (the PyTorch module reads these globals) ----
board_width = 8
board_height = 8
pieces_per_puzzle = 4
piece_width_max = 4
piece_height_max = 4

BOARD_SIZE = board_width * board_height                                   # 64
PIECES_SIZE = pieces_per_puzzle * piece_width_max * piece_height_max       # 64
IN_SIZE = BOARD_SIZE + PIECES_SIZE                                         # 128
NET_WIDTH = IN_SIZE                                                        # 128
OUT_SIZE = pieces_per_puzzle * 2                                           # 8


def _round_up(x, m):
    return pl.cdiv(x, m) * m


def _mlp_kernel(x_ref, w1_ref, b1_ref, w2_ref, b2_ref, w3_ref, b3_ref,
                w4_ref, b4_ref, o_ref):
    # Layer 1: single K=128 matmul on the fused [board | pieces] input.
    x = x_ref[...].astype(jnp.bfloat16)
    h = jnp.dot(x, w1_ref[...], preferred_element_type=jnp.float32) + b1_ref[...]
    h = jnp.maximum(h, 0.0)
    # Layer 2
    h = jnp.dot(h.astype(jnp.bfloat16), w2_ref[...],
                preferred_element_type=jnp.float32) + b2_ref[...]
    h = jnp.maximum(h, 0.0)
    # Layer 3
    h = jnp.dot(h.astype(jnp.bfloat16), w3_ref[...],
                preferred_element_type=jnp.float32) + b3_ref[...]
    h = jnp.maximum(h, 0.0)
    # Layer 4: narrow (block_b, 8) head, written natively (no lane padding).
    o_ref[...] = jnp.dot(h.astype(jnp.bfloat16), w4_ref[...],
                         preferred_element_type=jnp.float32) + b4_ref[...]


def _const_spec(shape):
    # Weight/bias block: full extent, same block for every grid step ->
    # DMA'd into VMEM once, resident across the whole grid.
    return pl.BlockSpec(shape, lambda i: (0, 0))


def _choose_block_b(B, block_b):
    """Batch tile: multiple of 8, <= batch, and >= 2 grid steps when B allows
    (so v7x's two TensorCores both get work via the 'parallel' axis)."""
    b8 = _round_up(B, 8)
    bb = min(_round_up(block_b, 8), b8)
    if b8 >= 16 and (b8 // bb) < 2:
        bb = _round_up(pl.cdiv(b8, 2), 8)
    return bb


def shapeshift_solver_batch(net_in, params, *, block_b=512):
    """Batched forward.

    net_in: (B, IN_SIZE) — fused [board | pieces] rows, ideally bf16 (0/1
            masks need no f32 storage).  Returns (B, OUT_SIZE) float32.
    """
    B = net_in.shape[0]
    x = net_in.reshape(B, IN_SIZE)

    bb = _choose_block_b(B, block_b)
    b_pad = _round_up(B, bb)
    if b_pad != B:
        x = jnp.pad(x, ((0, b_pad - B), (0, 0)))

    out = pl.pallas_call(
        _mlp_kernel,
        out_shape=jax.ShapeDtypeStruct((b_pad, OUT_SIZE), jnp.float32),
        grid=(b_pad // bb,),
        in_specs=[
            pl.BlockSpec((bb, IN_SIZE), lambda i: (i, 0)),   # fused input
            _const_spec((IN_SIZE, NET_WIDTH)),               # w1 (bf16)
            _const_spec((1, NET_WIDTH)),                     # b1 (f32)
            _const_spec((NET_WIDTH, NET_WIDTH)),             # w2
            _const_spec((1, NET_WIDTH)),                     # b2
            _const_spec((NET_WIDTH, NET_WIDTH)),             # w3
            _const_spec((1, NET_WIDTH)),                     # b3
            _const_spec((NET_WIDTH, OUT_SIZE)),              # w4 (narrow)
            _const_spec((1, OUT_SIZE)),                      # b4 (narrow)
        ],
        out_specs=pl.BlockSpec((bb, OUT_SIZE), lambda i: (i, 0)),
        compiler_params=pltpu.CompilerParams(
            dimension_semantics=("parallel",)),
    )(x, params["w1"], params["b1"], params["w2"], params["b2"],
      params["w3"], params["b3"], params["w4"], params["b4"])

    # Row trim only if the batch didn't divide the tile (demo avoids it).
    return out if b_pad == B else out[:B]


def assemble_net_in(boards, pieces):
    """Fuse boards (B, H, W) and pieces (B, P, h, w) into (B, IN_SIZE) bf16.
    In production this layout should come straight from the data pipeline so
    no extra XLA concat/cast pass runs before the kernel."""
    B = boards.shape[0]
    bd = boards.reshape(B, BOARD_SIZE)
    pc = pieces.reshape(B, PIECES_SIZE)
    return jnp.concatenate([bd, pc], axis=1).astype(jnp.bfloat16)


def shapeshift_solver_pallas(board, pieces, params):
    """Single-sample forward, faithful to ShapeshiftSolver.forward(board, pieces)."""
    v = [board.reshape(1, BOARD_SIZE)]
    for piece, _, _ in pieces:
        v.append(piece.reshape(1, piece_width_max * piece_height_max))
    net_in = jnp.concatenate(v, axis=1).astype(jnp.bfloat16)
    return shapeshift_solver_batch(net_in, params, block_b=8)[0]


def init_params(key):
    """nn.Linear-style U(-1/sqrt(fan_in), 1/sqrt(fan_in)) init.
    Weights stored transposed (in, out) in bf16; biases f32; W4/b4 narrow."""
    def uniform(k, shape, fan_in, dtype):
        bound = 1.0 / (fan_in ** 0.5)
        return jax.random.uniform(k, shape, jnp.float32, -bound, bound).astype(dtype)

    k = jax.random.split(key, 8)
    return {
        "w1": uniform(k[0], (IN_SIZE, NET_WIDTH), IN_SIZE, jnp.bfloat16),
        "b1": uniform(k[1], (1, NET_WIDTH), IN_SIZE, jnp.float32),
        "w2": uniform(k[2], (NET_WIDTH, NET_WIDTH), NET_WIDTH, jnp.bfloat16),
        "b2": uniform(k[3], (1, NET_WIDTH), NET_WIDTH, jnp.float32),
        "w3": uniform(k[4], (NET_WIDTH, NET_WIDTH), NET_WIDTH, jnp.bfloat16),
        "b3": uniform(k[5], (1, NET_WIDTH), NET_WIDTH, jnp.float32),
        "w4": uniform(k[6], (NET_WIDTH, OUT_SIZE), NET_WIDTH, jnp.bfloat16),
        "b4": uniform(k[7], (1, OUT_SIZE), NET_WIDTH, jnp.float32),
    }


def _reference_batch(net_in, params):
    """Pure-JAX reference with identical math (bf16 dot inputs, f32 accumulate)."""
    x = net_in.astype(jnp.bfloat16)
    h = jnp.dot(x, params["w1"], preferred_element_type=jnp.float32) + params["b1"]
    h = jnp.maximum(h, 0.0)
    h = jnp.dot(h.astype(jnp.bfloat16), params["w2"],
                preferred_element_type=jnp.float32) + params["b2"]
    h = jnp.maximum(h, 0.0)
    h = jnp.dot(h.astype(jnp.bfloat16), params["w3"],
                preferred_element_type=jnp.float32) + params["b3"]
    h = jnp.maximum(h, 0.0)
    return jnp.dot(h.astype(jnp.bfloat16), params["w4"],
                   preferred_element_type=jnp.float32) + params["b4"]


if __name__ == "__main__":
    key = jax.random.PRNGKey(0)
    kb, kp = jax.random.split(key)

    # bf16 0/1 masks directly from the "producer" — no f32 storage anywhere.
    B = 16
    boards = (jax.random.uniform(kb, (B, board_height, board_width)) > 0.5
              ).astype(jnp.bfloat16)
    pieces = (jax.random.uniform(
        kp, (B, pieces_per_puzzle, piece_height_max, piece_width_max)) > 0.5
              ).astype(jnp.bfloat16)

    params = init_params(jax.random.PRNGKey(42))

    # Batched path. Default block_b=512; at this demo batch the tile logic
    # picks bb=8 -> a 2-step grid (exercises resident weights + both TCs on
    # v7x) with no trailing row trim.
    net_in = assemble_net_in(boards, pieces)
    out = jax.block_until_ready(shapeshift_solver_batch(net_in, params))
    assert out.shape == (B, OUT_SIZE)

    ref = _reference_batch(net_in, params)
    assert jnp.allclose(out, ref, atol=2e-3, rtol=2e-3), \
        float(jnp.max(jnp.abs(out - ref)))

    # Single-sample path, faithful to the PyTorch forward(board, pieces) signature.
    piece_list = [(pieces[0, j], 0, 0) for j in range(pieces_per_puzzle)]
    out1 = jax.block_until_ready(
        shapeshift_solver_pallas(boards[0], piece_list, params))
    assert out1.shape == (OUT_SIZE,)
    assert jnp.allclose(out1, ref[0], atol=2e-3, rtol=2e-3)

    print("KERNEL_OK")
</pallas_src>

<mosaic_0001>
module attributes {stable_mosaic.version = 11 : i64} {
  func.func @_mlp_kernel(%arg0: i32, %arg1: memref<8x128xbf16, #tpu.memory_space<vmem>>, %arg2: memref<128x128xbf16, #tpu.memory_space<vmem>>, %arg3: memref<1x128xf32, #tpu.memory_space<vmem>>, %arg4: memref<128x128xbf16, #tpu.memory_space<vmem>>, %arg5: memref<1x128xf32, #tpu.memory_space<vmem>>, %arg6: memref<128x128xbf16, #tpu.memory_space<vmem>>, %arg7: memref<1x128xf32, #tpu.memory_space<vmem>>, %arg8: memref<128x8xbf16, #tpu.memory_space<vmem>>, %arg9: memref<1x8xf32, #tpu.memory_space<vmem>>, %arg10: memref<8x8xf32, #tpu.memory_space<vmem>>) attributes {dimension_semantics = [#tpu.dimension_semantics<parallel>], iteration_bounds = array<i64: 2>, scalar_prefetch = 0 : i64, scratch_operands = 0 : i64, tpu.core_type = #tpu.core_type<tc>, window_params = [{transform_indices = @transform_0, window_bounds = array<i64: 8, 128>}, {pipeline_mode = #tpu.pipeline_mode<synchronous>, transform_indices = @transform_1, window_bounds = array<i64: 128, 128>}, {pipeline_mode = #tpu.pipeline_mode<synchronous>, transform_indices = @transform_2, window_bounds = array<i64: 1, 128>}, {pipeline_mode = #tpu.pipeline_mode<synchronous>, transform_indices = @transform_3, window_bounds = array<i64: 128, 128>}, {pipeline_mode = #tpu.pipeline_mode<synchronous>, transform_indices = @transform_4, window_bounds = array<i64: 1, 128>}, {pipeline_mode = #tpu.pipeline_mode<synchronous>, transform_indices = @transform_5, window_bounds = array<i64: 128, 128>}, {pipeline_mode = #tpu.pipeline_mode<synchronous>, transform_indices = @transform_6, window_bounds = array<i64: 1, 128>}, {pipeline_mode = #tpu.pipeline_mode<synchronous>, transform_indices = @transform_7, window_bounds = array<i64: 128, 8>}, {pipeline_mode = #tpu.pipeline_mode<synchronous>, transform_indices = @transform_8, window_bounds = array<i64: 1, 8>}, {transform_indices = @transform_9, window_bounds = array<i64: 8, 8>}]} {
    %c0 = arith.constant 0 : index
    %c0_0 = arith.constant 0 : index
    %0 = vector.load %arg1[%c0, %c0_0] : memref<8x128xbf16, #tpu.memory_space<vmem>>, vector<8x128xbf16>
    %c0_1 = arith.constant 0 : index
    %c0_2 = arith.constant 0 : index
    %1 = vector.load %arg2[%c0_1, %c0_2] : memref<128x128xbf16, #tpu.memory_space<vmem>>, vector<128x128xbf16>
    %cst = arith.constant dense<0.000000e+00> : vector<8x128xf32>
    %2 = tpu.matmul %0, %1, %cst {dimension_numbers = #tpu.dot_dimension_numbers<[1], [0], [0], [1], [0, 0, 1, 1], [], []>} : vector<8x128xbf16>, vector<128x128xbf16>, vector<8x128xf32> -> vector<8x128xf32>
    %c0_3 = arith.constant 0 : index
    %c0_4 = arith.constant 0 : index
    %3 = vector.load %arg3[%c0_3, %c0_4] : memref<1x128xf32, #tpu.memory_space<vmem>>, vector<1x128xf32>
    %4 = vector.broadcast %3 : vector<1x128xf32> to vector<8x128xf32>
    %5 = arith.addf %2, %4 : vector<8x128xf32>
    %cst_5 = arith.constant 0.000000e+00 : f32
    %6 = vector.broadcast %cst_5 : f32 to vector<8x128xf32>
    %7 = arith.maximumf %5, %6 : vector<8x128xf32>
    %8 = arith.truncf %7 : vector<8x128xf32> to vector<8x128xbf16>
    %c0_6 = arith.constant 0 : index
    %c0_7 = arith.constant 0 : index
    %9 = vector.load %arg4[%c0_6, %c0_7] : memref<128x128xbf16, #tpu.memory_space<vmem>>, vector<128x128xbf16>
    %cst_8 = arith.constant dense<0.000000e+00> : vector<8x128xf32>
    %10 = tpu.matmul %8, %9, %cst_8 {dimension_numbers = #tpu.dot_dimension_numbers<[1], [0], [0], [1], [0, 0, 1, 1], [], []>} : vector<8x128xbf16>, vector<128x128xbf16>, vector<8x128xf32> -> vector<8x128xf32>
    %c0_9 = arith.constant 0 : index
    %c0_10 = arith.constant 0 : index
    %11 = vector.load %arg5[%c0_9, %c0_10] : memref<1x128xf32, #tpu.memory_space<vmem>>, vector<1x128xf32>
    %12 = vector.broadcast %11 : vector<1x128xf32> to vector<8x128xf32>
    %13 = arith.addf %10, %12 : vector<8x128xf32>
    %cst_11 = arith.constant 0.000000e+00 : f32
    %14 = vector.broadcast %cst_11 : f32 to vector<8x128xf32>
    %15 = arith.maximumf %13, %14 : vector<8x128xf32>
    %16 = arith.truncf %15 : vector<8x128xf32> to vector<8x128xbf16>
    %c0_12 = arith.constant 0 : index
    %c0_13 = arith.constant 0 : index
    %17 = vector.load %arg6[%c0_12, %c0_13] : memref<128x128xbf16, #tpu.memory_space<vmem>>, vector<128x128xbf16>
    %cst_14 = arith.constant dense<0.000000e+00> : vector<8x128xf32>
    %18 = tpu.matmul %16, %17, %cst_14 {dimension_numbers = #tpu.dot_dimension_numbers<[1], [0], [0], [1], [0, 0, 1, 1], [], []>} : vector<8x128xbf16>, vector<128x128xbf16>, vector<8x128xf32> -> vector<8x128xf32>
    %c0_15 = arith.constant 0 : index
    %c0_16 = arith.constant 0 : index
    %19 = vector.load %arg7[%c0_15, %c0_16] : memref<1x128xf32, #tpu.memory_space<vmem>>, vector<1x128xf32>
    %20 = vector.broadcast %19 : vector<1x128xf32> to vector<8x128xf32>
    %21 = arith.addf %18, %20 : vector<8x128xf32>
    %cst_17 = arith.constant 0.000000e+00 : f32
    %22 = vector.broadcast %cst_17 : f32 to vector<8x128xf32>
    %23 = arith.maximumf %21, %22 : vector<8x128xf32>
    %24 = arith.truncf %23 : vector<8x128xf32> to vector<8x128xbf16>
    %c0_18 = arith.constant 0 : index
    %c0_19 = arith.constant 0 : index
    %25 = vector.load %arg8[%c0_18, %c0_19] : memref<128x8xbf16, #tpu.memory_space<vmem>>, vector<128x8xbf16>
    %cst_20 = arith.constant dense<0.000000e+00> : vector<8x8xf32>
    %26 = tpu.matmul %24, %25, %cst_20 {dimension_numbers = #tpu.dot_dimension_numbers<[1], [0], [0], [1], [0, 0, 1, 1], [], []>} : vector<8x128xbf16>, vector<128x8xbf16>, vector<8x8xf32> -> vector<8x8xf32>
    %c0_21 = arith.constant 0 : index
    %c0_22 = arith.constant 0 : index
    %27 = vector.load %arg9[%c0_21, %c0_22] : memref<1x8xf32, #tpu.memory_space<vmem>>, vector<1x8xf32>
    %28 = vector.broadcast %27 : vector<1x8xf32> to vector<8x8xf32>
    %29 = arith.addf %26, %28 : vector<8x8xf32>
    %c0_23 = arith.constant 0 : index
    %c0_24 = arith.constant 0 : index
    %30 = vector.load %arg10[%c0_23, %c0_24] : memref<8x8xf32, #tpu.memory_space<vmem>>, vector<8x8xf32>
    tpu.vector_store %arg10[%c0_23, %c0_24], %29 {strides = array<i32>} : memref<8x8xf32, #tpu.memory_space<vmem>>, vector<8x8xf32>,
    return
  }
  func.func @transform_0(%arg0: i32) -> (i32, i32) {
    %c0_i32 = arith.constant 0 : i32
    %c0_i32_0 = arith.constant 0 : i32
    return %arg0, %c0_i32 : i32, i32
  }
  func.func @transform_1(%arg0: i32) -> (i32, i32) {
    %c0_i32 = arith.constant 0 : i32
    %c0_i32_0 = arith.constant 0 : i32
    %c0_i32_1 = arith.constant 0 : i32
    return %c0_i32, %c0_i32_0 : i32, i32
  }
  func.func @transform_2(%arg0: i32) -> (i32, i32) {
    %c0_i32 = arith.constant 0 : i32
    %c0_i32_0 = arith.constant 0 : i32
    %c0_i32_1 = arith.constant 0 : i32
    return %c0_i32, %c0_i32_0 : i32, i32
  }
  func.func @transform_3(%arg0: i32) -> (i32, i32) {
    %c0_i32 = arith.constant 0 : i32
    %c0_i32_0 = arith.constant 0 : i32
    %c0_i32_1 = arith.constant 0 : i32
    return %c0_i32, %c0_i32_0 : i32, i32
  }
  func.func @transform_4(%arg0: i32) -> (i32, i32) {
    %c0_i32 = arith.constant 0 : i32
    %c0_i32_0 = arith.constant 0 : i32
    %c0_i32_1 = arith.constant 0 : i32
    return %c0_i32, %c0_i32_0 : i32, i32
  }
  func.func @transform_5(%arg0: i32) -> (i32, i32) {
    %c0_i32 = arith.constant 0 : i32
    %c0_i32_0 = arith.constant 0 : i32
    %c0_i32_1 = arith.constant 0 : i32
    return %c0_i32, %c0_i32_0 : i32, i32
  }
  func.func @transform_6(%arg0: i32) -> (i32, i32) {
    %c0_i32 = arith.constant 0 : i32
    %c0_i32_0 = arith.constant 0 : i32
    %c0_i32_1 = arith.constant 0 : i32
    return %c0_i32, %c0_i32_0 : i32, i32
  }
  func.func @transform_7(%arg0: i32) -> (i32, i32) {
    %c0_i32 = arith.constant 0 : i32
    %c0_i32_0 = arith.constant 0 : i32
    %c0_i32_1 = arith.constant 0 : i32
    return %c0_i32, %c0_i32_0 : i32, i32
  }
  func.func @transform_8(%arg0: i32) -> (i32, i32) {
    %c0_i32 = arith.constant 0 : i32
    %c0_i32_0 = arith.constant 0 : i32
    %c0_i32_1 = arith.constant 0 : i32
    return %c0_i32, %c0_i32_0 : i32, i32
  }
  func.func @transform_9(%arg0: i32) -> (i32, i32) {
    %c0_i32 = arith.constant 0 : i32
    %c0_i32_0 = arith.constant 0 : i32
    return %arg0, %c0_i32 : i32, i32
  }
}

</mosaic_0001>

<bundles_post_ra>
// kernel: tpu_custom_call.1
= control target key start
LH: loop header
LB: loop body
LE: loop exit
PB: predicated region body
PF: predicated region fallthrough
CT: control target
= control target key end

     0   :  { %14 = vsyncpa [#allocation3], 0  ;;  %s1637_s0 = inlined_call_operand.hbm [shape: bf16[16,128], index: 0, kind: input, shape index: {}]   ;;  %s1638_s1 = inlined_call_operand.vmem [shape: bf16[128,128], index: 1, kind: input, shape index: {}]   ;;  %s1639_s2 = inlined_call_operand.vmem [shape: f32[1,128], index: 2, kind: input, shape index: {}]   ;;  %s1640_s3 = inlined_call_operand.hbm [shape: bf16[128,128], index: 3, kind: input, shape index: {}]   ;;  %s1641_s4 = inlined_call_operand.vmem [shape: f32[1,128], index: 4, kind: input, shape index: {}]   ;;  %s1642_s5 = inlined_call_operand.hbm [shape: bf16[128,128], index: 5, kind: input, shape index: {}]   ;;  %s1643_s6 = inlined_call_operand.vmem [shape: f32[1,128], index: 6, kind: input, shape index: {}]   ;;  %s1644_s7 = inlined_call_operand.vmem [shape: bf16[128,8], index: 7, kind: input, shape index: {}]   ;;  %s1645_s8 = inlined_call_operand.vmem [shape: f32[1,8], index: 8, kind: input, shape index: {}]   ;;  %s1646_s9 = inlined_call_operand.vmem [shape: f32[16,8], index: 9, kind: output, shape index: {}]  }
   0x1   :  { %16 = vsyncpa [#allocation3 + $0x1], 0 }
   0x2   :  { %17 = vsyncpa [#allocation5], 0  ;;  %s1360_s30 = smov 0   ;;  %s1362_s10 = smov 0  }
   0x3   :  { %s1364_s11 = smov 0   ;;  %s1366_s12 = smov 0  }
   0x4 LB: > { %s1379_s13 = sadd.s32 4294967295, %s1301_s12   ;;  %p43_p0 = scmp.ne.s32.totalorder %s1293_s10, %s1289_s30  ;;  %s1301_s12 = sphi %s1366_s12, %s1661_s12   ;;  %s1297_s11 = sphi %s1364_s11, %s1660_s11   ;;  %s1293_s10 = sphi %s1362_s10, %s1659_s10   ;;  %s1289_s30 = sphi %s1360_s30, %s1658_s30  }
   0x5   : > { %p1647_p1 = scmp.eq.s32.totalorder %s1379_s13, 0  ;;  %p916_p2 = scmp.ge.s32.totalorder %s1301_s12, 1 }
   0x6   : > { %p248_p3 = scmp.lt.s32.totalorder %s1301_s12, 3  ;;  %s1303_s16 = smov [#allocation4]  }
   0x7   : > { %p1387_p4 = por %p1647_p1, %p43_p0  ;;  %s266_s17 = sshll.u32 %s1303_s16, 4  ;;  %s267_s17 = int_to_ptr.vmem [resolvable:$true] %s266_s17 }
   0x8   : > { %p1391_p5 = pnand %p916_p2, %p248_p3  ;;  %s1304_s19 = smov [#allocation6]  }
   0x9   : > { %s1650_s14 = scalar_select %p1387_p4, 1, 0 }
   0xa   : > { %s1651_s15 = scalar_select %p1391_p5, 1, 0 }
   0xb   : > { %p1091_p6 = pneg %p1391_p5  ;;  %s282_s20 = sshll.u32 %s1304_s19, 4  ;;  %s1403_s20 = int_to_ptr.vmem [resolvable:$true] %s282_s20 }
   0xc   : > { %s1177_s23 = scalar_lea.hbm %s1640_s3, 1024 }
   0xd   : > { %p1399_p7 = pnand %p1091_p6, %p1647_p1  ;;  %p1178_p8 = scmp.ne.s32.totalorder %s1640_s3, %s1177_s23 }
   0xe   : > { %p1184_p12 = scmp.lt.u32.totalorder %s1177_s23, %s1640_s3 }
   0xf   : > { %p1179_p9 = pneg %p1399_p7 }
  0x11   : > { %p1180_p10 = pnand %p1179_p9, %p1178_p8 }
  0x13   : > { %p1181_p11 = pneg %p1180_p10 }
  0x15   : > { %p1186_p13 = pnand %p1184_p12, %p1181_p11 }
  0x17   : > { %1189 = shalt.err (!%p1186_p13)
}
  0x18   : > { %s1190_s28 = scalar_lea.vmem %s267_s17, 1024  ;;  %p1198_p6 = scmp.lt.s32.totalorder %s267_s17, %s267_s17 }
  0x19   : > { %p1191_p0 = scmp.ne.s32.totalorder %s267_s17, %s1190_s28  ;;  %p1199_p1 = scmp.lt.s32.totalorder %s1190_s28, %s1190_s28 }
  0x1b   : > { %p1193_p2 = pnand %p1191_p0, %p1179_p9  ;;  %p1200_p4 = por %p1199_p1, %p1198_p6 }
  0x1d   : > { %p1194_p3 = pneg %p1193_p2 }
  0x1f   : > { %p1201_p5 = pnand %p1200_p4, %p1194_p3 }
  0x21   : > { %1204 = shalt.err (!%p1201_p5)
}
  0x22   : > { %s1305_s29 = smov 64   ;;  %s1306_s30 = smov 4  }
  0x23   : > { %1094 = dma.hbm_to_vmem [thread:$0]  (!%p1399_p7), %s1640_s3, 1024, %s267_s17, [#allocation5], %s1305_s29, %s1305_s29, %s1306_s30  }
  0x24   : > { %s1205_s23 = scalar_lea.hbm %s1642_s5, 1024 }
  0x25   : > { %p1206_p8 = scmp.ne.s32.totalorder %s1642_s5, %s1205_s23  ;;  %p1212_p5 = scmp.lt.u32.totalorder %s1205_s23, %s1642_s5 }
  0x27   : > { %p1208_p1 = pnand %p1206_p8, %p1179_p9 }
  0x29   : > { %p1209_p4 = pneg %p1208_p1 }
  0x2b   : > { %p1214_p10 = pnand %p1212_p5, %p1209_p4 }
  0x2d   : > { %1217 = shalt.err (!%p1214_p10)
}
  0x2e   : > { %s1218_s17 = scalar_lea.vmem %s1403_s20, 1024  ;;  %p1226_p0 = scmp.lt.s32.totalorder %s1403_s20, %s1403_s20 }
  0x2f   : > { %p1219_p11 = scmp.ne.s32.totalorder %s1403_s20, %s1218_s17  ;;  %p1227_p2 = scmp.lt.s32.totalorder %s1218_s17, %s1218_s17 }
  0x31   : > { %p1221_p12 = pnand %p1219_p11, %p1179_p9  ;;  %p1228_p3 = por %p1227_p2, %p1226_p0 }
  0x33   : > { %p1222_p13 = pneg %p1221_p12 }
  0x35   : > { %p1229_p6 = pnand %p1228_p3, %p1222_p13 }
  0x37   : > { %1232 = shalt.err (!%p1229_p6)
}
  0x38   : > { %1097 = dma.hbm_to_vmem [thread:$0]  (!%p1399_p7), %s1642_s5, 1024, %s1403_s20, [#allocation5], %s1305_s29, %s1305_s29, %s1306_s30  }
  0x39   : > { %s1453_s19 = sadd.s32 1, %s1301_s12   ;;  %s30_s21 = sadd.s32 1, %s1297_s11 }
  0x3a   : > { %s27_s18 = ssub.s32 %s1301_s12, %s1453_s19  ;;  %p37_p9 = scmp.ne.s32.totalorder %s1297_s11, %s1293_s10 }
  0x3b   : > { %p28_p8 = scmp.eq.s32.totalorder %s27_s18, 0  ;;  %p38_p1 = scmp.eq.s32.totalorder %s1301_s12, 0 }
  0x3c   : > { %p1104_p4 = scmp.lt.s32.totalorder %s1301_s12, 2  ;;  %s305_s22 = sand.u32 1, %s1297_s11  }
  0x3d   : > { %s1464_s23 = scalar_select %p28_p8, %s1297_s11, %s30_s21  }
  0x3e   : > { %p39_p5 = por %p38_p1, %p37_p9  ;;  %s920_s24 = sshll.u32 %s305_s22, 2 }
  0x3f   : > { %s921_s25 = sshll.u32 %s1301_s12, 6  ;;  %s309_s20 = scalar_lea.vmem [#allocation2], %s920_s24 }
  0x40   : > { %s1470_s17 = scalar_lea.hbm %s1637_s0, %s921_s25  ;;  %s316_s29 = sshll.u32 %s309_s20, 4  ;;  %s1476_s29 = int_to_ptr.vmem [resolvable:$true] %s316_s29 }
  0x41   : > { %p1472_p7 = pnand %p1104_p4, %p39_p5  ;;  %s306_s12 = scalar_lea.sflag [#allocation3], %s305_s22 }
  0x42   : > { %s1233_s28 = scalar_lea.hbm %s1470_s17, 64  ;;  %s1238_s18 = scalar_lea.hbm %s1637_s0, 128 }
  0x43   : > { %p1234_p10 = scmp.ne.s32.totalorder %s1470_s17, %s1233_s28  ;;  %p1235_p11 = pneg %p1472_p7 }
  0x44   : > { %p1239_p0 = scmp.lt.u32.totalorder %s1470_s17, %s1637_s0  ;;  %p1240_p2 = scmp.lt.u32.totalorder %s1238_s18, %s1233_s28 }
  0x45   : > { %p1236_p12 = pnand %p1235_p11, %p1234_p10  ;;  %p1242_p6 = scmp.lt.u32.totalorder %s1233_s28, %s1470_s17 }
  0x46   : > { %p1241_p3 = por %p1240_p2, %p1239_p0 }
  0x47   : > { %p1237_p13 = pneg %p1236_p12 }
  0x48   : > { %p1243_p9 = por %p1242_p6, %p1241_p3 }
  0x4a   : > { %p1244_p8 = pnand %p1243_p9, %p1237_p13 }
  0x4c   : > { %1247 = shalt.err (!%p1244_p8)
}
  0x4d   : > { %s1248_s22 = scalar_lea.vmem %s1476_s29, 64  ;;  %s1307_s26 = smov [#allocation2]  }
  0x4e   : > { %p1249_p1 = scmp.ne.s32.totalorder %s1476_s29, %s1248_s22  ;;  %s1253_s27 = sshll.u32 %s1307_s26, 4  ;;  %s1254_s27 = int_to_ptr.vmem [resolvable:$false] %s1253_s27 }
  0x4f   : > { %s1255_s20 = scalar_lea.vmem %s1254_s27, 128  ;;  %p1256_p10 = scmp.lt.s32.totalorder %s1476_s29, %s1254_s27 }
  0x50   : > { %p1251_p4 = pnand %p1249_p1, %p1235_p11  ;;  %p1257_p12 = scmp.lt.s32.totalorder %s1255_s20, %s1248_s22 }
  0x52   : > { %p1252_p5 = pneg %p1251_p4  ;;  %p1258_p0 = por %p1257_p12, %p1256_p10 }
  0x54   : > { %p1259_p2 = pnand %p1258_p0, %p1252_p5 }
  0x56   : > { %1262 = shalt.err (!%p1259_p2)
}
  0x57   : > { %1101 = dma.hbm_to_vmem [thread:$0]  (!%p1472_p7), %s1470_s17, 64, %s1476_s29, %s306_s12  }
  0x58   : > { %p1654_p13 = scmp.ne.s32.totalorder %s1651_s15, 0 }
  0x59   : > { %s327_s28 = sand.u32 (!%p1654_p13), 1, %s1293_s10   ;;  %p1655_p11 = scmp.ne.s32.totalorder (!%p1654_p13), %s1650_s14, 0 }
  0x5a   : > { %325 = sbr.rel (%p1654_p13) target bundleno = 1004 (0x3ec), region = 56  ;;  %s1506_s16 = sshll.u32 (!%p1654_p13), %s327_s28, 2 }
  0x5b   : > { %s328_s21 = scalar_lea.sflag (!%p1654_p13), [#allocation3], %s327_s28  ;;  %s331_s18 = scalar_lea.vmem (!%p1654_p13), [#allocation2], %s1506_s16 }
  0x61   : > { %1280 = dma.done.wait (%p1655_p11), %s328_s21, 64  }
  0x62   : > { %1282 = vsyncadd (%p1655_p11), %s328_s21, 4294967232  ;;  %p1656_p3 = scmp.eq.s32.totalorder %s1379_s13, 0 }
  0x64   : > { %1284 = dma.done.wait (%p1656_p3), [#allocation5], 2048   ;;  %p1657_p7 = pmov %p1656_p3 }
  0x65   : > { %v1308_v0 = vmov 0.0   ;;  %vm1309_vm0 = vmmov 0   ;;  %v1145_v1 = vld [vmem:[%s1638_s1] sm:$0xff]   ;;  %v1146_v2 = vld [vmem:[%s1638_s1 + $0x8] sm:$0xff]   ;;  %v1147_v3 = vld [vmem:[%s1638_s1 + $0x10] sm:$0xff]   ;;  %p373_p6 = scmp.lt.s32.totalorder %s1379_s13, 1 }
  0x66   : > { %1286 = vsyncadd (%p1657_p7), [#allocation5], 4294965248  ;;  %1001 = vmatprep.subr.bf16.mxu0 %v1308_v0  ;;  %1017 = vmatprep.mubr.msk.bf16.mxu0 %vm1309_vm0, %v1308_v0  ;;  %v1153_v4 = vld [vmem:[#allocation4] sm:$0xff]   ;;  %v1148_v5 = vld [vmem:[%s1638_s1 + $0x18] sm:$0xff]   ;;  %vm829_vm1 = vcmask 64512  }
  0x67   : > { %1021 = vmatprep.subr.bf16.mxu1 %v1308_v0  ;;  %1037 = vmatprep.mubr.msk.bf16.mxu1 %vm1309_vm0, %v1308_v0  ;;  %v1154_v6 = vld [vmem:[#allocation4 + $0x8] sm:$0xff]   ;;  %v1149_v7 = vld [vmem:[%s1638_s1 + $0x20] sm:$0xff]   ;;  %v1155_v8 = vld [vmem:[#allocation4 + $0x10] sm:$0xff]   ;;  %s1663_s13 = smov (!%p373_p6, %s1379_s13), 1 }
  0x68   : > { %1002 = vmatpush3.bf16.msra.mxu0 %v1145_v1  ;;  %1022 = vmatpush3.bf16.msra.mxu1 %v1153_v4  ;;  %v1150_v9 = vld [vmem:[%s1638_s1 + $0x28] sm:$0xff]   ;;  %v1156_v10 = vld [vmem:[#allocation4 + $0x18] sm:$0xff]   ;;  %v1151_v11 = vld [vmem:[%s1638_s1 + $0x30] sm:$0xff]   ;;  %s926_s24 = sshll.u32 %s1663_s13, 3 }
  0x69   : > { %1003 = vmatprep.subr.bf16.mxu0 %v1308_v0  ;;  %1023 = vmatprep.subr.bf16.mxu1 %v1308_v0  ;;  %v1157_v12 = vld [vmem:[#allocation4 + $0x20] sm:$0xff]   ;;  %v1152_v13 = vld [vmem:[%s1638_s1 + $0x38] sm:$0xff]   ;;  %v1158_v14 = vld [vmem:[#allocation4 + $0x28] sm:$0xff]   ;;  %s376_s20 = scalar_lea.vmem %s1646_s9, %s926_s24 }
  0x6a   : > { %v378_v15 = vld [vmem:[%s331_s18] sm:$0xf]  ;;  %v1159_v16 = vld [vmem:[#allocation4 + $0x30] sm:$0xff]   ;;  %v1161_v18 = vld [vmem:[#allocation6] sm:$0xff]  }
  0x6b   : > { %v1160_v17 = vld [vmem:[#allocation4 + $0x38] sm:$0xff]   ;;  %v1162_v19 = vld [vmem:[#allocation6 + $0x8] sm:$0xff]   ;;  %v1163_v20 = vld [vmem:[#allocation6 + $0x10] sm:$0xff]  }
  0x6c   : > { %1004 = vmatpush3.bf16.msra.mxu0 %v1146_v2  ;;  %1024 = vmatpush3.bf16.msra.mxu1 %v1154_v6  ;;  %v1164_v21 = vld [vmem:[#allocation6 + $0x18] sm:$0xff]   ;;  %v1165_v22 = vld [vmem:[#allocation6 + $0x20] sm:$0xff]   ;;  %v1166_v23 = vld [vmem:[#allocation6 + $0x28] sm:$0xff]  }
  0x6d   : > { %1005 = vmatprep.subr.bf16.mxu0 %v1308_v0  ;;  %1025 = vmatprep.subr.bf16.mxu1 %v1308_v0  ;;  %v927_v24 = vld [vmem:[%s1639_s2] ss:$0 sm:$0xff]  ;;  %v1167_v32 = vld [vmem:[#allocation6 + $0x30] sm:$0xff]   ;;  %v1170_v35 = vld [vmem:[%s1644_s7 + $0x8] sm:$0xff]  }
  0x6e   : > { %v1168_v33 = vld [vmem:[#allocation6 + $0x38] sm:$0xff]   ;;  %v1171_v36 = vld [vmem:[%s1644_s7 + $0x10] sm:$0xff]   ;;  %v1172_v37 = vld [vmem:[%s1644_s7 + $0x18] sm:$0xff]  }
  0x6f   : > { %v1169_v34 = vld [vmem:[%s1644_s7] sm:$0xff]   ;;  %v1174_v39 = vld [vmem:[%s1644_s7 + $0x28] sm:$0xff]   ;;  %v1175_v48 = vld [vmem:[%s1644_s7 + $0x30] sm:$0xff]  }
  0x70   : > { %1006 = vmatpush3.bf16.msra.mxu0 %v1147_v3  ;;  %1026 = vmatpush3.bf16.msra.mxu1 %v1155_v8  ;;  %v1173_v38 = vld [vmem:[%s1644_s7 + $0x20] sm:$0xff]   ;;  %v1176_v49 = vld [vmem:[%s1644_s7 + $0x38] sm:$0xff]  }
  0x71   : > { %1007 = vmatprep.subr.bf16.mxu0 %v1308_v0  ;;  %1027 = vmatprep.subr.bf16.mxu1 %v1308_v0  ;;  %v936_v40 = vld [vmem:[%s1641_s4] ss:$0 sm:$0xff] }
  0x72   : > { %v945_v50 = vld [vmem:[%s1643_s6] ss:$0 sm:$0xff] }
  0x73   : > { %v954_v58 = vld [vmem:[%s1645_s8] ss:$0 sm:$0xff] }
  0x74   : > { %1008 = vmatpush3.bf16.msra.mxu0 %v1148_v5  ;;  %1028 = vmatpush3.bf16.msra.mxu1 %v1156_v10 }
  0x75   : > { %1009 = vmatprep.subr.bf16.mxu0 %v1308_v0  ;;  %1029 = vmatprep.subr.bf16.mxu1 %v1308_v0 }
  0x78   : > { %1010 = vmatpush3.bf16.msra.mxu0 %v1149_v7  ;;  %1030 = vmatpush3.bf16.msra.mxu1 %v1157_v12 }
  0x79   : > { %1011 = vmatprep.subr.bf16.mxu0 %v1308_v0  ;;  %1031 = vmatprep.subr.bf16.mxu1 %v1308_v0 }
  0x7c   : > { %1012 = vmatpush3.bf16.msra.mxu0 %v1150_v9  ;;  %1032 = vmatpush3.bf16.msra.mxu1 %v1158_v14 }
  0x7d   : > { %1013 = vmatprep.subr.bf16.mxu0 %v1308_v0  ;;  %1033 = vmatprep.subr.bf16.mxu1 %v1308_v0 }
  0x80   : > { %1014 = vmatpush3.bf16.msra.mxu0 %v1151_v11  ;;  %1034 = vmatpush3.bf16.msra.mxu1 %v1159_v16 }
  0x81   : > { %1015 = vmatprep.subr.bf16.mxu0 %v1308_v0  ;;  %1035 = vmatprep.subr.bf16.mxu1 %v1308_v0 }
  0x84   : > { %1016 = vmatpush3.bf16.msra.mxu0 %v1152_v13  ;;  %1036 = vmatpush3.bf16.msra.mxu1 %v1160_v17 }
  0x85   : > { %1041 = vmatprep.subr.bf16.mxu0 %v1308_v0  ;;  %1061 = vmatprep.subr.bf16.mxu1 %v1308_v0 }
  0x87   : > { %1018 = vmatmul.mubr.bf16.vlgmr.msra.gmra.mrb[0].mxu0 %v378_v15 }
  0x88   : > { %1057 = vmatprep.mubr.msk.bf16.mxu0 %vm1309_vm0, %v1308_v0  ;;  %1042 = vmatpush3.bf16.msra.mxu0 %v1161_v18 }
  0x89   : > { %1043 = vmatprep.subr.bf16.mxu0 %v1308_v0 }
  0x8c   : > { %1044 = vmatpush3.bf16.msra.mxu0 %v1162_v19 }
  0x8d   : > { %1045 = vmatprep.subr.bf16.mxu0 %v1308_v0 }
  0x90   : > { %1046 = vmatpush3.bf16.msra.mxu0 %v1163_v20 }
  0x91   : > { %1047 = vmatprep.subr.bf16.mxu0 %v1308_v0 }
  0x94   : > { %1048 = vmatpush3.bf16.msra.mxu0 %v1164_v21 }
  0x95   : > { %1049 = vmatprep.subr.bf16.mxu0 %v1308_v0 }
  0x98   : > { %1050 = vmatpush3.bf16.msra.mxu0 %v1165_v22 }
  0x99   : > { %1051 = vmatprep.subr.bf16.mxu0 %v1308_v0 }
  0x9c   : > { %1052 = vmatpush3.bf16.msra.mxu0 %v1166_v23 }
  0x9d   : > { %1053 = vmatprep.subr.bf16.mxu0 %v1308_v0 }
  0xa0   : > { %1054 = vmatpush3.bf16.msra.mxu0 %v1167_v32 }
  0xa1   : > { %1055 = vmatprep.subr.bf16.mxu0 %v1308_v0 }
  0xa4   : > { %1056 = vmatpush3.bf16.msra.mxu0 %v1168_v33 }
 0x15a   : > { %v484_v25 = vpop.f32.mrb[0].mxu0 }
 0x15b   : > { %v485_v26 = vadd.f32 %v927_v24, %v484_v25  ;;  %v1019_v27 = vpop.f32.mrb[1].mxu0 }
 0x15c   : > { %v487_v28 = vpop.f32.mrb[2].mxu0 }
 0x15d   : > { %v490_v29 = vmax.f32 %v485_v26, 0.0  ;;  %v1020_v30 = vpop.f32.mrb[3].mxu0 }
 0x15f   : > { %v491_v31 = vpack.c.bf16 %v490_v29, %v490_v29 }
 0x161   : > { %1038 = vmatmul.mubr.bf16.vlgmr.msra.gmra.mrb[0].mxu1 %v491_v31 }
 0x162   : > { %1077 = vmatprep.mubr.msk.bf16.mxu1 %vm1309_vm0, %v1308_v0  ;;  %1062 = vmatpush3.bf16.msra.mxu1 %v1169_v34 }
 0x163   : > { %1063 = vmatprep.subr.bf16.mxu1 %v1308_v0 }
 0x166   : > { %1064 = vmatpush3.bf16.msra.mxu1 %v1170_v35 }
 0x167   : > { %1065 = vmatprep.subr.bf16.mxu1 %v1308_v0 }
 0x16a   : > { %1066 = vmatpush3.bf16.msra.mxu1 %v1171_v36 }
 0x16b   : > { %1067 = vmatprep.subr.bf16.mxu1 %v1308_v0 }
 0x16e   : > { %1068 = vmatpush3.bf16.msra.mxu1 %v1172_v37 }
 0x16f   : > { %1069 = vmatprep.subr.bf16.mxu1 %v1308_v0 }
 0x172   : > { %1070 = vmatpush3.bf16.msra.mxu1 %v1173_v38 }
 0x173   : > { %1071 = vmatprep.subr.bf16.mxu1 %v1308_v0 }
 0x176   : > { %1072 = vmatpush3.bf16.msra.mxu1 %v1174_v39 }
 0x177   : > { %1073 = vmatprep.subr.bf16.mxu1 %v1308_v0 }
 0x17a   : > { %1074 = vmatpush3.bf16.msra.mxu1 %v1175_v48 }
 0x17b   : > { %1075 = vmatprep.subr.bf16.mxu1 %v1308_v0 }
 0x17e   : > { %1076 = vmatpush3.bf16.msra.mxu1 %v1176_v49 }
 0x234   : > { %v597_v41 = vpop.f32.mrb[0].mxu1 }
 0x235   : > { %v598_v42 = vadd.f32 %v936_v40, %v597_v41  ;;  %v1039_v43 = vpop.f32.mrb[1].mxu1 }
 0x236   : > { %v600_v44 = vpop.f32.mrb[2].mxu1 }
 0x237   : > { %v603_v45 = vmax.f32 %v598_v42, 0.0  ;;  %v1040_v46 = vpop.f32.mrb[3].mxu1 }
 0x239   : > { %v604_v47 = vpack.c.bf16 %v603_v45, %v603_v45 }
 0x23b   : > { %1058 = vmatmul.mubr.bf16.vlgmr.msra.gmra.mrb[4].mxu0 %v604_v47 }
 0x30e   : > { %v710_v51 = vpop.f32.mrb[4].mxu0 }
 0x30f   : > { %v711_v52 = vadd.f32 %v945_v50, %v710_v51  ;;  %v1059_v53 = vpop.f32.mrb[5].mxu0 }
 0x310   : > { %v713_v54 = vpop.f32.mrb[6].mxu0 }
 0x311   : > { %v716_v55 = vmax.f32 %v711_v52, 0.0  ;;  %v1060_v56 = vpop.f32.mrb[7].mxu0 }
 0x313   : > { %v717_v57 = vpack.c.bf16 %v716_v55, %v716_v55 }
 0x315   : > { %1078 = vmatmul.mubr.bf16.vlgmr.msra.gmra.mrb[4].mxu1 %v717_v57 }
 0x3e8   : > { %v823_v59 = vpop.f32.mrb[4].mxu1 }
 0x3e9   : > { %v824_v60 = vadd.f32 %v954_v58, %v823_v59  ;;  %v1079_v61 = vpop.f32.mrb[5].mxu1 }
 0x3ea   : > { %v826_v62 = vpop.f32.mrb[6].mxu1 }
 0x3eb   : > { %830 = vst.msk [vmem:[%s376_s20] sm:$0xff] %vm829_vm1, %v824_v60  ;;  %v1080_v63 = vpop.f32.mrb[7].mxu1 }
 0x3ec PF: > { %p20_p9 = scmp.ge.s32.totalorder %s1453_s19, 4   ;;  %s1658_s30 = smov %s1293_s10 }
 0x3ed   : > { %s1659_s10 = smov %s1297_s11  ;;  %s1660_s11 = smov %s1464_s23 }
 0x3ee   : > { %s1661_s12 = smov %s1453_s19  ;;  %22 = sbr.rel (!%p20_p9) target bundleno = 4 (0x4), region = 104 }
 0x3f5   :  { %850 = vsyncpa [#allocation3], 1 }
 0x3f6   :  { %852 = vsyncpa [#allocation3 + $0x1], 1 }
 0x3f7   :  { %853 = vsyncpa [#allocation5], 1 }

</bundles_post_ra>
